<compile_context>
chip_gen: v7x
topology: tpu7x:2x2x1
jax: 0.10.0
libtpu: 0.0.40
codegen_flags: <defaults>
</compile_context>

<pallas_src>
import functools

import jax
import jax.numpy as jnp
from jax.experimental import pallas as pl
from jax.experimental.pallas import tpu as pltpu


def _round_up(a, b):
    return (a + b - 1) // b * b


def _curriculum_ce_kernel(params_ref, x_ref, t_ref, lab_ref,
                          cels_sum_ref, w_sum_ref, *, C, R, HW, mask_tail):
    # params_ref: SMEM (4,) f32 = [1-ls, ls/C, 1/opt_t, mu]
    b = pl.program_id(1)           # batch index (innermost, accumulation axis)

    @pl.when(b == 0)
    def _():
        cels_sum_ref[...] = jnp.zeros_like(cels_sum_ref)
        w_sum_ref[...] = jnp.zeros_like(w_sum_ref)

    one_minus_ls = params_ref[0]
    ls_over_c = params_ref[1]
    inv_opt_t = params_ref[2]
    mu = params_ref[3]

    x = x_ref[0].astype(jnp.float32)      # (C, R, 128) student logits
    t = t_ref[0].astype(jnp.float32)      # (C, R, 128) teacher logits
    lab = lab_ref[0]                      # (R, 128) int32 labels

    cls_iota = jax.lax.broadcasted_iota(jnp.int32, x.shape, 0)   # (C, R, 128)
    oh = (cls_iota == lab[None, :, :]).astype(jnp.float32)       # one-hot

    # Label-smoothed CE (algebraically simplified):
    #   cels = (1-ls)*(lse - xs_true) + (ls/C)*(C*lse - sum_c xs)
    xm = jnp.max(x, axis=0)                                      # (R, 128)
    xs = x - xm[None, :, :]                                      # (C, R, 128)
    lse = jnp.log(jnp.sum(jnp.exp(xs), axis=0))                  # (R, 128)
    xs_true = jnp.sum(oh * xs, axis=0)                           # (R, 128)
    xs_sum = jnp.sum(xs, axis=0)                                 # (R, 128)
    cels = one_minus_ls * (lse - xs_true) + ls_over_c * (float(C) * lse - xs_sum)

    # Curriculum weight: softmax(teacher/opt_t) prob of the true class >= mu.
    # Only the true-class probability is computed (single reciprocal per pixel).
    ts = t * inv_opt_t
    tm = jnp.max(ts, axis=0)
    te = jnp.exp(ts - tm[None, :, :])
    te_sum = jnp.sum(te, axis=0)                                 # (R, 128)
    te_true = jnp.sum(oh * te, axis=0)                           # (R, 128)
    true_prob = te_true * pl.reciprocal(te_sum)                  # exact (approx=False)
    w = jnp.where(true_prob >= mu, 1.0, 0.0).astype(jnp.float32)

    if mask_tail:
        # Zero contributions of padded pixels (static Python branch).
        tile = pl.program_id(0)
        row = jax.lax.broadcasted_iota(jnp.int32, (R, 128), 0)
        lane = jax.lax.broadcasted_iota(jnp.int32, (R, 128), 1)
        pix = (tile * R + row) * 128 + lane
        valid = (pix < HW).astype(jnp.float32)
        cels = cels * valid
        w = w * valid

    cels_sum_ref[...] += cels
    w_sum_ref[...] += w


def curriculum_ce_loss_with_ls(outputs, teacher_out, labels,
                               label_smoothing, mu, opt_t):
    """JAX/Pallas equivalent of curriculum_CELossWithLS.forward.

    outputs, teacher_out: (N, C, H, W) logits (NCHW, any float dtype).
    labels: (N, H, W) integer class ids.
    """
    N, C, H, W = outputs.shape
    HW = H * W
    rows = -(-HW // 128)                                  # ceil(HW/128)

    # Tile sizing: keep the double-buffered per-step footprint small enough for
    # the default scoped-VMEM limit on every generation (incl. v7x's 64 MiB).
    in_bytes = jnp.dtype(outputs.dtype).itemsize
    per_row = 2 * (2 * C * 128 * in_bytes)    # student + teacher, double-buffered
    per_row += 2 * 128 * 4                    # labels (int32), double-buffered
    per_row += 2 * 128 * 4                    # two resident f32 accumulator rows
    cap = (8 * 1024 * 1024) // per_row
    cap = max(8, min(128, (cap // 8) * 8))
    R = min(cap, _round_up(rows, 8))          # sublane rows per tile, multiple of 8
    padded_rows = _round_up(rows, R)
    num_tiles = padded_rows // R
    HW_pad = padded_rows * 128

    # Keep original dtype on the DMA path; cast to f32 inside the kernel.
    x = outputs.reshape(N, C, HW)
    t = teacher_out.reshape(N, C, HW)
    lab = labels.reshape(N, HW).astype(jnp.int32)
    if HW_pad != HW:
        pad = HW_pad - HW
        x = jnp.pad(x, ((0, 0), (0, 0), (0, pad)))
        t = jnp.pad(t, ((0, 0), (0, 0), (0, pad)))
        lab = jnp.pad(lab, ((0, 0), (0, pad)))
    x = x.reshape(N, C, padded_rows, 128)
    t = t.reshape(N, C, padded_rows, 128)
    lab = lab.reshape(N, padded_rows, 128)

    params = jnp.array([1.0 - label_smoothing,
                        label_smoothing / C,
                        1.0 / opt_t,
                        mu], dtype=jnp.float32)

    kernel = functools.partial(_curriculum_ce_kernel,
                               C=C, R=R, HW=HW, mask_tail=(HW_pad != HW))

    cels_sum, w_sum = pl.pallas_call(
        kernel,
        out_shape=(jax.ShapeDtypeStruct((padded_rows, 128), jnp.float32),
                   jax.ShapeDtypeStruct((padded_rows, 128), jnp.float32)),
        grid=(num_tiles, N),
        in_specs=[
            pl.BlockSpec(memory_space=pltpu.MemorySpace.SMEM),            # params
            pl.BlockSpec((1, C, R, 128), lambda tile, b: (b, 0, tile, 0)),  # student
            pl.BlockSpec((1, C, R, 128), lambda tile, b: (b, 0, tile, 0)),  # teacher
            pl.BlockSpec((1, R, 128), lambda tile, b: (b, tile, 0)),        # labels
        ],
        out_specs=(
            pl.BlockSpec((R, 128), lambda tile, b: (tile, 0)),   # Σ_batch cels per px
            pl.BlockSpec((R, 128), lambda tile, b: (tile, 0)),   # Σ_batch weights per px
        ),
        compiler_params=pltpu.CompilerParams(
            dimension_semantics=("parallel", "arbitrary")),
    )(params, x, t, lab)

    # Exact separable form of the PyTorch (N,1,H,W)*(N,H,W) broadcast + .mean():
    #   mean_{i,j,p} w[i,p]*cels[j,p] = Σ_p (Σ_i w)(Σ_j cels) / (N*N*HW)
    total = jnp.sum(w_sum * cels_sum)
    return total / jnp.float32(N * N * HW)


def _reference(outputs, teacher_out, labels, ls, mu, opt_t):
    """Pure-JAX reference mirroring the PyTorch code line by line."""
    C = outputs.shape[1]
    oh = jax.nn.one_hot(labels, C, axis=1, dtype=jnp.float32)        # (N,C,H,W)
    smooth = oh * (1.0 - ls) + ls / C
    log_sm = jax.nn.log_softmax(outputs.astype(jnp.float32), axis=1)
    cels = -(smooth * log_sm).sum(axis=1)                            # (N,H,W)
    probs = jax.nn.softmax(teacher_out.astype(jnp.float32) / opt_t, axis=1)
    true_prob = (probs * oh).max(axis=1, keepdims=True)              # (N,1,H,W)
    weights = jnp.where(true_prob >= mu, 1.0, 0.0)
    # same (N,1,H,W) * (N,H,W) -> (N,N,H,W) broadcast as PyTorch
    return jnp.mean(weights * cels)


if __name__ == "__main__":
    key = jax.random.PRNGKey(0)
    N, C, H, W = 2, 4, 16, 16          # num_classes = 4
    k1, k2, k3 = jax.random.split(key, 3)
    outputs = jax.random.normal(k1, (N, C, H, W), dtype=jnp.float32)
    teacher_out = jax.random.normal(k2, (N, C, H, W), dtype=jnp.float32)
    labels = jax.random.randint(k3, (N, H, W), 0, C, dtype=jnp.int32)

    label_smoothing, mu, opt_t = 0.1, 0.3, 2.0

    loss = curriculum_ce_loss_with_ls(outputs, teacher_out, labels,
                                      label_smoothing, mu, opt_t)
    loss = jax.block_until_ready(loss)

    ref = _reference(outputs, teacher_out, labels, label_smoothing, mu, opt_t)
    assert abs(float(loss) - float(ref)) < 1e-4 * max(1.0, abs(float(ref))), (
        float(loss), float(ref))

    print("KERNEL_OK")
</pallas_src>

<mosaic_0001>
module attributes {stable_mosaic.version = 11 : i64} {
  func.func @_curriculum_ce_kernel(%arg0: i32, %arg1: i32, %arg2: memref<4xf32, #tpu.memory_space<smem>>, %arg3: memref<1x4x8x128xf32, #tpu.memory_space<vmem>>, %arg4: memref<1x4x8x128xf32, #tpu.memory_space<vmem>>, %arg5: memref<1x8x128xi32, #tpu.memory_space<vmem>>, %arg6: memref<8x128xf32, #tpu.memory_space<vmem>>, %arg7: memref<8x128xf32, #tpu.memory_space<vmem>>) attributes {dimension_semantics = [#tpu.dimension_semantics<parallel>, #tpu.dimension_semantics<arbitrary>], iteration_bounds = array<i64: 1, 2>, scalar_prefetch = 0 : i64, scratch_operands = 0 : i64, tpu.core_type = #tpu.core_type<tc>, window_params = [{transform_indices = @transform_0, window_bounds = array<i64: 4>}, {transform_indices = @transform_1, window_bounds = array<i64: 1, 4, 8, 128>}, {transform_indices = @transform_2, window_bounds = array<i64: 1, 4, 8, 128>}, {transform_indices = @transform_3, window_bounds = array<i64: 1, 8, 128>}, {transform_indices = @transform_4, window_bounds = array<i64: 8, 128>}, {transform_indices = @transform_5, window_bounds = array<i64: 8, 128>}]} {
    %c0_i32 = arith.constant 0 : i32
    %0 = arith.cmpi eq, %arg1, %c0_i32 : i32
    %1 = arith.extui %0 : i1 to i32
    %c0_i32_0 = arith.constant 0 : i32
    %2 = arith.cmpi ne, %1, %c0_i32_0 : i32
    scf.if %2 {
      %cst_29 = arith.constant 0.000000e+00 : f32
      %75 = vector.broadcast %cst_29 : f32 to vector<8x128xf32>
      %c0_30 = arith.constant 0 : index
      %c0_31 = arith.constant 0 : index
      %76 = vector.load %arg6[%c0_30, %c0_31] : memref<8x128xf32, #tpu.memory_space<vmem>>, vector<8x128xf32>
      tpu.vector_store %arg6[%c0_30, %c0_31], %75 {strides = array<i32>} : memref<8x128xf32, #tpu.memory_space<vmem>>, vector<8x128xf32>,
      %cst_32 = arith.constant 0.000000e+00 : f32
      %77 = vector.broadcast %cst_32 : f32 to vector<8x128xf32>
      %c0_33 = arith.constant 0 : index
      %c0_34 = arith.constant 0 : index
      %78 = vector.load %arg7[%c0_33, %c0_34] : memref<8x128xf32, #tpu.memory_space<vmem>>, vector<8x128xf32>
      tpu.vector_store %arg7[%c0_33, %c0_34], %77 {strides = array<i32>} : memref<8x128xf32, #tpu.memory_space<vmem>>, vector<8x128xf32>,
    } else {
    }
    %c0 = arith.constant 0 : index
    %3 = memref.load %arg2[%c0] : memref<4xf32, #tpu.memory_space<smem>>
    %c1 = arith.constant 1 : index
    %4 = memref.load %arg2[%c1] : memref<4xf32, #tpu.memory_space<smem>>
    %c2 = arith.constant 2 : index
    %5 = memref.load %arg2[%c2] : memref<4xf32, #tpu.memory_space<smem>>
    %c3 = arith.constant 3 : index
    %6 = memref.load %arg2[%c3] : memref<4xf32, #tpu.memory_space<smem>>
    %c0_1 = arith.constant 0 : index
    %c0_2 = arith.constant 0 : index
    %c0_3 = arith.constant 0 : index
    %c0_4 = arith.constant 0 : index
    %7 = vector.load %arg3[%c0_1, %c0_2, %c0_3, %c0_4] : memref<1x4x8x128xf32, #tpu.memory_space<vmem>>, vector<1x4x8x128xf32>
    %8 = vector.shape_cast %7 : vector<1x4x8x128xf32> to vector<4x8x128xf32>
    %c0_5 = arith.constant 0 : index
    %c0_6 = arith.constant 0 : index
    %c0_7 = arith.constant 0 : index
    %c0_8 = arith.constant 0 : index
    %9 = vector.load %arg4[%c0_5, %c0_6, %c0_7, %c0_8] : memref<1x4x8x128xf32, #tpu.memory_space<vmem>>, vector<1x4x8x128xf32>
    %10 = vector.shape_cast %9 : vector<1x4x8x128xf32> to vector<4x8x128xf32>
    %c0_9 = arith.constant 0 : index
    %c0_10 = arith.constant 0 : index
    %c0_11 = arith.constant 0 : index
    %11 = vector.load %arg5[%c0_9, %c0_10, %c0_11] : memref<1x8x128xi32, #tpu.memory_space<vmem>>, vector<1x8x128xi32>
    %12 = vector.shape_cast %11 : vector<1x8x128xi32> to vector<8x128xi32>
    %13 = tpu.iota {dimensions = array<i32: 0>} : vector<4x8x128xi32>
    %14 = vector.shape_cast %12 : vector<8x128xi32> to vector<1x8x128xi32>
    %15 = vector.broadcast %14 : vector<1x8x128xi32> to vector<4x8x128xi32>
    %16 = arith.cmpi eq, %13, %15 : vector<4x8x128xi32>
    %17 = arith.extui %16 : vector<4x8x128xi1> to vector<4x8x128xi32>
    %18 = arith.sitofp %17 : vector<4x8x128xi32> to vector<4x8x128xf32>
    %cst = arith.constant dense<0xFF800000> : vector<8x128xf32>
    %19 = vector.multi_reduction <maximumf>, %8, %cst [0] : vector<4x8x128xf32> to vector<8x128xf32>
    %20 = vector.shape_cast %19 : vector<8x128xf32> to vector<1x8x128xf32>
    %21 = vector.broadcast %20 : vector<1x8x128xf32> to vector<4x8x128xf32>
    %22 = arith.subf %8, %21 : vector<4x8x128xf32>
    %23 = math.exp %22 : vector<4x8x128xf32>
    %cst_12 = arith.constant dense<0.000000e+00> : vector<8x128xf32>
    %24 = vector.multi_reduction <add>, %23, %cst_12 [0] : vector<4x8x128xf32> to vector<8x128xf32>
    %25 = math.log %24 : vector<8x128xf32>
    %26 = arith.mulf %18, %22 : vector<4x8x128xf32>
    %cst_13 = arith.constant dense<0.000000e+00> : vector<8x128xf32>
    %27 = vector.multi_reduction <add>, %26, %cst_13 [0] : vector<4x8x128xf32> to vector<8x128xf32>
    %cst_14 = arith.constant dense<0.000000e+00> : vector<8x128xf32>
    %28 = vector.multi_reduction <add>, %22, %cst_14 [0] : vector<4x8x128xf32> to vector<8x128xf32>
    %29 = arith.subf %25, %27 : vector<8x128xf32>
    %30 = vector.broadcast %3 : f32 to vector<8x128xf32>
    %31 = arith.mulf %30, %29 : vector<8x128xf32>
    %cst_15 = arith.constant 4.000000e+00 : f32
    %32 = vector.broadcast %cst_15 : f32 to vector<8x128xf32>
    %33 = arith.mulf %32, %25 : vector<8x128xf32>
    %34 = arith.subf %33, %28 : vector<8x128xf32>
    %35 = vector.broadcast %4 : f32 to vector<8x128xf32>
    %36 = arith.mulf %35, %34 : vector<8x128xf32>
    %37 = arith.addf %31, %36 : vector<8x128xf32>
    %38 = vector.broadcast %5 : f32 to vector<4x8x128xf32>
    %39 = arith.mulf %10, %38 : vector<4x8x128xf32>
    %cst_16 = arith.constant dense<0xFF800000> : vector<8x128xf32>
    %40 = vector.multi_reduction <maximumf>, %39, %cst_16 [0] : vector<4x8x128xf32> to vector<8x128xf32>
    %41 = vector.shape_cast %40 : vector<8x128xf32> to vector<1x8x128xf32>
    %42 = vector.broadcast %41 : vector<1x8x128xf32> to vector<4x8x128xf32>
    %43 = arith.subf %39, %42 : vector<4x8x128xf32>
    %44 = math.exp %43 : vector<4x8x128xf32>
    %cst_17 = arith.constant dense<0.000000e+00> : vector<8x128xf32>
    %45 = vector.multi_reduction <add>, %44, %cst_17 [0] : vector<4x8x128xf32> to vector<8x128xf32>
    %46 = arith.mulf %18, %44 : vector<4x8x128xf32>
    %cst_18 = arith.constant dense<0.000000e+00> : vector<8x128xf32>
    %47 = vector.multi_reduction <add>, %46, %cst_18 [0] : vector<4x8x128xf32> to vector<8x128xf32>
    %48 = tpu.reciprocal %45 : vector<8x128xf32> -> vector<8x128xf32>
    %49 = arith.mulf %47, %48 : vector<8x128xf32>
    %50 = vector.broadcast %6 : f32 to vector<8x128xf32>
    %51 = arith.cmpf oge, %49, %50 : vector<8x128xf32>
    %cst_19 = arith.constant 1.000000e+00 : f32
    %cst_20 = arith.constant 0.000000e+00 : f32
    %52 = vector.broadcast %cst_19 : f32 to vector<8x128xf32>
    %53 = vector.broadcast %cst_20 : f32 to vector<8x128xf32>
    %54 = arith.select %51, %52, %53 : vector<8x128xi1>, vector<8x128xf32>
    %55 = tpu.iota {dimensions = array<i32: 0>} : vector<8x128xi32>
    %56 = tpu.iota {dimensions = array<i32: 1>} : vector<8x128xi32>
    %c8_i32 = arith.constant 8 : i32
    %57 = arith.muli %arg0, %c8_i32 : i32
    %58 = vector.broadcast %57 : i32 to vector<8x128xi32>
    %59 = arith.addi %58, %55 : vector<8x128xi32>
    %c128_i32 = arith.constant 128 : i32
    %60 = vector.broadcast %c128_i32 : i32 to vector<8x128xi32>
    %61 = arith.muli %59, %60 : vector<8x128xi32>
    %62 = arith.addi %61, %56 : vector<8x128xi32>
    %c256_i32 = arith.constant 256 : i32
    %63 = vector.broadcast %c256_i32 : i32 to vector<8x128xi32>
    %64 = arith.cmpi slt, %62, %63 : vector<8x128xi32>
    %65 = arith.extui %64 : vector<8x128xi1> to vector<8x128xi32>
    %66 = arith.sitofp %65 : vector<8x128xi32> to vector<8x128xf32>
    %67 = arith.mulf %37, %66 : vector<8x128xf32>
    %68 = arith.mulf %54, %66 : vector<8x128xf32>
    %c0_21 = arith.constant 0 : index
    %c0_22 = arith.constant 0 : index
    %69 = vector.load %arg6[%c0_21, %c0_22] : memref<8x128xf32, #tpu.memory_space<vmem>>, vector<8x128xf32>
    %70 = arith.addf %69, %67 : vector<8x128xf32>
    %c0_23 = arith.constant 0 : index
    %c0_24 = arith.constant 0 : index
    %71 = vector.load %arg6[%c0_23, %c0_24] : memref<8x128xf32, #tpu.memory_space<vmem>>, vector<8x128xf32>
    tpu.vector_store %arg6[%c0_23, %c0_24], %70 {strides = array<i32>} : memref<8x128xf32, #tpu.memory_space<vmem>>, vector<8x128xf32>,
    %c0_25 = arith.constant 0 : index
    %c0_26 = arith.constant 0 : index
    %72 = vector.load %arg7[%c0_25, %c0_26] : memref<8x128xf32, #tpu.memory_space<vmem>>, vector<8x128xf32>
    %73 = arith.addf %72, %68 : vector<8x128xf32>
    %c0_27 = arith.constant 0 : index
    %c0_28 = arith.constant 0 : index
    %74 = vector.load %arg7[%c0_27, %c0_28] : memref<8x128xf32, #tpu.memory_space<vmem>>, vector<8x128xf32>
    tpu.vector_store %arg7[%c0_27, %c0_28], %73 {strides = array<i32>} : memref<8x128xf32, #tpu.memory_space<vmem>>, vector<8x128xf32>,
    return
  }
  func.func @transform_0(%arg0: i32, %arg1: i32) -> i32 {
    %c0_i32 = arith.constant 0 : i32
    %c0_i32_0 = arith.constant 0 : i32
    return %c0_i32 : i32
  }
  func.func @transform_1(%arg0: i32, %arg1: i32) -> (i32, i32, i32, i32) {
    %c0_i32 = arith.constant 0 : i32
    %c0_i32_0 = arith.constant 0 : i32
    %c0_i32_1 = arith.constant 0 : i32
    return %arg1, %c0_i32, %arg0, %c0_i32_0 : i32, i32, i32, i32
  }
  func.func @transform_2(%arg0: i32, %arg1: i32) -> (i32, i32, i32, i32) {
    %c0_i32 = arith.constant 0 : i32
    %c0_i32_0 = arith.constant 0 : i32
    %c0_i32_1 = arith.constant 0 : i32
    return %arg1, %c0_i32, %arg0, %c0_i32_0 : i32, i32, i32, i32
  }
  func.func @transform_3(%arg0: i32, %arg1: i32) -> (i32, i32, i32) {
    %c0_i32 = arith.constant 0 : i32
    %c0_i32_0 = arith.constant 0 : i32
    return %arg1, %arg0, %c0_i32 : i32, i32, i32
  }
  func.func @transform_4(%arg0: i32, %arg1: i32) -> (i32, i32) {
    %c0_i32 = arith.constant 0 : i32
    %c0_i32_0 = arith.constant 0 : i32
    return %arg0, %c0_i32 : i32, i32
  }
  func.func @transform_5(%arg0: i32, %arg1: i32) -> (i32, i32) {
    %c0_i32 = arith.constant 0 : i32
    %c0_i32_0 = arith.constant 0 : i32
    return %arg0, %c0_i32 : i32, i32
  }
}

</mosaic_0001>

<bundles_post_ra>
// kernel: tpu_custom_call.1
= control target key start
LH: loop header
LB: loop body
LE: loop exit
PB: predicated region body
PF: predicated region fallthrough
CT: control target
= control target key end

     0   :  { %s1334_s0 = inlined_call_operand.hbm [shape: f32[4], index: 0, kind: input, shape index: {}]   ;;  %s1335_s1 = inlined_call_operand.hbm [shape: f32[2,4,8,128], index: 1, kind: input, shape index: {}]   ;;  %s1336_s2 = inlined_call_operand.hbm [shape: f32[2,4,8,128], index: 2, kind: input, shape index: {}]   ;;  %s1337_s3 = inlined_call_operand.hbm [shape: s32[2,8,128], index: 3, kind: input, shape index: {}]   ;;  %s1338_s4 = inlined_call_operand.hbm [shape: f32[8,128], index: 4, kind: output, shape index: {0}]   ;;  %s1339_s5 = inlined_call_operand.hbm [shape: f32[8,128], index: 5, kind: output, shape index: {1}]  }
   0x1   :  { %1348 = sst [smem:[#allocation19_spill]] %s1335_s1 }
   0x2   :  { %1349 = sst [smem:[#allocation20_spill]] %s1336_s2 }
   0x3   :  { %11 = vsyncpa [#allocation5], 0 }
   0x4   :  { %12 = vsyncpa [#allocation3], 0 }
   0x5   :  { %14 = vsyncpa [#allocation3 + $0x1], 0 }
   0x6   :  { %15 = vsyncpa [#allocation8], 0 }
   0x7   :  { %17 = vsyncpa [#allocation8 + $0x1], 0 }
   0x8   :  { %18 = vsyncpa [#allocation4], 0 }
   0x9   :  { %19 = vsyncpa [#allocation12], 0  ;;  %s1038_s18 = smov 0   ;;  %s1040_s19 = smov 0  }
   0xa   :  { %s1042_s20 = smov 0   ;;  %s1044_s21 = smov 0  }
   0xb   :  { %s1046_s22 = smov 0   ;;  %s1048_s23 = smov 0  }
   0xc LB: > { %s34_s24 = sadd.s32 1, %s992_s22  ;;  %s67_s25 = sadd.s32 1, %s984_s20  ;;  %s996_s23 = sphi %s1048_s23, %s25_s23   ;;  %s992_s22 = sphi %s1046_s22, %s1372_s22   ;;  %s988_s21 = sphi %s1044_s21, %s1371_s21   ;;  %s984_s20 = sphi %s1042_s20, %s1370_s20   ;;  %s980_s19 = sphi %s1040_s19, %s1369_s19   ;;  %s976_s18 = sphi %s1038_s18, %s1368_s18  }
   0xd   : > { %p35_p0 = scmp.ge.s32.totalorder %s34_s24, 2  ;;  %p74_p1 = scmp.ne.s32.totalorder %s984_s20, %s980_s19 }
   0xe   : > { %p75_p2 = scmp.eq.s32.totalorder %s996_s23, 0  ;;  %p694_p4 = scmp.lt.s32.totalorder %s996_s23, 2 }
   0xf   : > { %s1374_s24 = smov (%p35_p0, %s34_s24), 0  ;;  %s1079_s27 = sand.u32 1, %s984_s20  }
  0x10   : > { %1350 = sst [smem:[#allocation18_spill]] %s1374_s24  ;;  %p76_p3 = por %p75_p2, %p74_p1 }
  0x11   : > { %s62_s26 = ssub.s32 %s992_s22, %s1374_s24  ;;  %s631_s28 = sshll.u32 %s1079_s27, 5 }
  0x12   : > { %p65_p5 = scmp.eq.s32.totalorder %s62_s26, 0  ;;  %s659_s29 = sshll.u32 %s992_s22, 9 }
  0x13   : > { %p1083_p6 = pnand %p694_p4, %p76_p3  ;;  %s243_s7 = sand.u32 1, %s996_s23  }
  0x14   : > { %s1088_s6 = scalar_select %p65_p5, %s984_s20, %s67_s25  }
  0x15   : > { %s1351_s30 = scalar_select %p1083_p6, 1, 0 }
  0x16   : > { %s1352_s2 = sld [smem:[#allocation20_spill]]  ;;  %s247_s11 = scalar_lea.vmem [#allocation7], %s631_s28 }
  0x17   : > { %s255_s12 = sshll.u32 %s247_s11, 4  ;;  %s1102_s13 = scalar_lea.sflag [#allocation8], %s243_s7  ;;  %s1100_s12 = int_to_ptr.vmem [resolvable:$true] %s255_s12 }
  0x18   : > { %p1108_p8 = pneg %p1083_p6 }
  0x1c   : > { %s1096_s10 = scalar_lea.hbm %s1352_s2, %s659_s29  ;;  %s780_s25 = scalar_lea.hbm %s1352_s2, 1024 }
  0x1d   : > { %s775_s14 = scalar_lea.hbm %s1096_s10, 512  ;;  %p781_p11 = scmp.lt.u32.totalorder %s1096_s10, %s1352_s2 }
  0x1e   : > { %p776_p7 = scmp.ne.s32.totalorder %s1096_s10, %s775_s14  ;;  %p782_p12 = scmp.lt.u32.totalorder %s780_s25, %s775_s14 }
  0x1f   : > { %p784_p0 = scmp.lt.u32.totalorder %s775_s14, %s1096_s10 }
  0x20   : > { %p778_p9 = pnand %p1108_p8, %p776_p7  ;;  %p783_p13 = por %p782_p12, %p781_p11 }
  0x22   : > { %p779_p10 = pneg %p778_p9  ;;  %p785_p1 = por %p784_p0, %p783_p13 }
  0x24   : > { %p786_p2 = pnand %p785_p1, %p779_p10 }
  0x26   : > { %789 = shalt.err (!%p786_p2)
}
  0x27   : > { %s790_s7 = scalar_lea.vmem %s1100_s12, 512  ;;  %s998_s9 = smov [#allocation7]  }
  0x28   : > { %p791_p3 = scmp.ne.s32.totalorder %s1100_s12, %s790_s7  ;;  %s795_s11 = sshll.u32 %s998_s9, 4  ;;  %s796_s11 = int_to_ptr.vmem [resolvable:$false] %s795_s11 }
  0x29   : > { %s797_s16 = scalar_lea.vmem %s796_s11, 1024  ;;  %p798_p7 = scmp.lt.s32.totalorder %s1100_s12, %s796_s11 }
  0x2a   : > { %p793_p4 = pnand %p791_p3, %p1108_p8  ;;  %p799_p9 = scmp.lt.s32.totalorder %s797_s16, %s790_s7 }
  0x2c   : > { %p794_p5 = pneg %p793_p4  ;;  %p800_p11 = por %p799_p9, %p798_p7 }
  0x2e   : > { %p801_p12 = pnand %p800_p11, %p794_p5 }
  0x30   : > { %804 = shalt.err (!%p801_p12)
}
  0x31   : > { %s1340_s14 = smov 128   ;;  %s1341_s17 = smov 8  }
  0x32   : > { %689 = dma.hbm_to_vmem [thread:$0]  (!%p1083_p6), %s1096_s10, 512, %s1100_s12, %s1102_s13, %s1340_s14, %s1340_s14, %s1341_s17  }
  0x33   : > { %s1136_s25 = sadd.s32 4294967295, %s996_s23   ;;  %p80_p10 = scmp.ne.s32.totalorder %s980_s19, %s976_s18 }
  0x34   : > { %p1342_p13 = scmp.eq.s32.totalorder %s1136_s25, 0  ;;  %p628_p0 = scmp.ge.s32.totalorder %s996_s23, 1 }
  0x35   : > { %p199_p1 = scmp.lt.s32.totalorder %s996_s23, 3  ;;  %s1356_s1 = sld [smem:[#allocation19_spill]] }
  0x36   : > { %p1145_p2 = por %p1342_p13, %p80_p10  ;;  %s225_s7 = scalar_lea.vmem [#allocation6], %s631_s28 }
  0x37   : > { %p1149_p3 = pnand %p628_p0, %p199_p1  ;;  %s233_s9 = sshll.u32 %s225_s7, 4  ;;  %s1171_s9 = int_to_ptr.vmem [resolvable:$true] %s233_s9 }
  0x38   : > { %s1354_s26 = scalar_select %p1145_p2, 1, 0 }
  0x39   : > { %s1355_s8 = scalar_select %p1149_p3, 1, 0 }
  0x3a   : > { %p679_p4 = pneg %p1149_p3  ;;  %s222_s14 = scalar_lea.sflag [#allocation3], %s1079_s27 }
  0x3b   : > { %s1160_s18 = scalar_lea.hbm %s1356_s1, %s659_s29  ;;  %s810_s12 = scalar_lea.hbm %s1356_s1, 1024 }
  0x3c   : > { %p1167_p5 = pnand %p679_p4, %p1342_p13  ;;  %s805_s17 = scalar_lea.hbm %s1160_s18, 512 }
  0x3d   : > { %p806_p7 = scmp.ne.s32.totalorder %s1160_s18, %s805_s17  ;;  %p811_p12 = scmp.lt.u32.totalorder %s1160_s18, %s1356_s1 }
  0x3e   : > { %s1357_s16 = scalar_select %p1167_p5, 1, 0 }
  0x3f   : > { %p808_p9 = pnand %p806_p7, %p1108_p8  ;;  %p812_p10 = scmp.lt.u32.totalorder %s810_s12, %s805_s17 }
  0x40   : > { %p814_p1 = scmp.lt.u32.totalorder %s805_s17, %s1160_s18 }
  0x41   : > { %p809_p11 = pneg %p808_p9  ;;  %p813_p0 = por %p812_p10, %p811_p12 }
  0x43   : > { %p815_p4 = por %p814_p1, %p813_p0 }
  0x45   : > { %p816_p13 = pnand %p815_p4, %p809_p11 }
  0x47   : > { %819 = shalt.err (!%p816_p13)
}
  0x48   : > { %s820_s11 = scalar_lea.vmem %s1171_s9, 512  ;;  %s1001_s29 = smov [#allocation6]  }
  0x49   : > { %p821_p7 = scmp.ne.s32.totalorder %s1171_s9, %s820_s11  ;;  %s825_s10 = sshll.u32 %s1001_s29, 4  ;;  %s826_s10 = int_to_ptr.vmem [resolvable:$false] %s825_s10 }
  0x4a   : > { %s827_s28 = scalar_lea.vmem %s826_s10, 1024  ;;  %p828_p3 = scmp.lt.s32.totalorder %s1171_s9, %s826_s10 }
  0x4b   : > { %p823_p9 = pnand %p821_p7, %p1108_p8  ;;  %p829_p5 = scmp.lt.s32.totalorder %s827_s28, %s820_s11 }
  0x4d   : > { %p824_p2 = pneg %p823_p9  ;;  %p830_p12 = por %p829_p5, %p828_p3 }
  0x4f   : > { %p831_p10 = pnand %p830_p12, %p824_p2 }
  0x51   : > { %834 = shalt.err (!%p831_p10)
}
  0x52   : > { %s1358_s17 = smov 8   ;;  %s1359_s12 = smov 128  }
  0x53   : > { %686 = dma.hbm_to_vmem [thread:$0]  (!%p1083_p6), %s1160_s18, 512, %s1171_s9, %s222_s14, %s1359_s12, %s1359_s12, %s1358_s17  }
  0x54   : > { %s835_s1 = scalar_lea.hbm %s1334_s0, 16  ;;  %p1360_p2 = scmp.ne.s32.totalorder %s1357_s16, 0 }
  0x55   : > { %p836_p13 = scmp.ne.s32.totalorder %s1334_s0, %s835_s1  ;;  %p842_p0 = scmp.lt.u32.totalorder %s835_s1, %s1334_s0 }
  0x56   : > { %p837_p3 = pneg %p1360_p2 }
  0x58   : > { %p838_p5 = pnand %p837_p3, %p836_p13 }
  0x5a   : > { %p839_p11 = pneg %p838_p5 }
  0x5c   : > { %p844_p1 = pnand %p842_p0, %p839_p11 }
  0x5e   : > { %847 = shalt.err (!%p844_p1)
}
  0x5f   : > { %s1002_s24 = smov [#allocation2]   ;;  %s638_s9 = sshll.u32 %s992_s22, 7 }
  0x60   : > { %682 = dma.hbm_to_smem (!%p1360_p2), %s1334_s0, 16, %s1002_s24, [#allocation5]  }
  0x61   : > { %s1361_s17 = sshll.u32 %s1079_s27, 3  ;;  %s275_s1 = scalar_lea.hbm %s1337_s3, %s638_s9 }
  0x62   : > { %s269_s12 = scalar_lea.vmem [#allocation9], %s1361_s17  ;;  %s848_s2 = scalar_lea.hbm %s275_s1, 128 }
  0x63   : > { %s277_s7 = sshll.u32 %s269_s12, 4  ;;  %p849_p4 = scmp.ne.s32.totalorder %s275_s1, %s848_s2  ;;  %s278_s7 = int_to_ptr.vmem [resolvable:$true] %s277_s7 }
  0x64   : > { %s853_s28 = scalar_lea.hbm %s1337_s3, 256  ;;  %p854_p12 = scmp.lt.u32.totalorder %s275_s1, %s1337_s3 }
  0x65   : > { %p851_p7 = pnand %p849_p4, %p1108_p8  ;;  %p855_p10 = scmp.lt.u32.totalorder %s853_s28, %s848_s2 }
  0x66   : > { %p857_p2 = scmp.lt.u32.totalorder %s848_s2, %s275_s1 }
  0x67   : > { %p852_p9 = pneg %p851_p7  ;;  %p856_p13 = por %p855_p10, %p854_p12 }
  0x69   : > { %p858_p3 = por %p857_p2, %p856_p13 }
  0x6b   : > { %p859_p5 = pnand %p858_p3, %p852_p9 }
  0x6d   : > { %862 = shalt.err (!%p859_p5)
}
  0x6e   : > { %s863_s27 = scalar_lea.vmem %s278_s7, 128  ;;  %s1003_s18 = smov [#allocation9]  }
  0x6f   : > { %p864_p11 = scmp.ne.s32.totalorder %s278_s7, %s863_s27  ;;  %s868_s9 = sshll.u32 %s1003_s18, 4  ;;  %s869_s9 = int_to_ptr.vmem [resolvable:$false] %s868_s9 }
  0x70   : > { %s870_s17 = scalar_lea.vmem %s869_s9, 256  ;;  %p871_p4 = scmp.lt.s32.totalorder %s278_s7, %s869_s9 }
  0x71   : > { %p866_p0 = pnand %p864_p11, %p1108_p8  ;;  %p872_p7 = scmp.lt.s32.totalorder %s870_s17, %s863_s27 }
  0x73   : > { %p867_p1 = pneg %p866_p0  ;;  %p873_p6 = por %p872_p7, %p871_p4 }
  0x75   : > { %p874_p10 = pnand %p873_p6, %p867_p1 }
  0x77   : > { %877 = shalt.err (!%p874_p10)
}
  0x78   : > { %p1362_p12 = scmp.ne.s32.totalorder %s1351_s30, 0  ;;  %p1363_p9 = scmp.ne.s32.totalorder %s1355_s8, 0 }
  0x79   : > { %p1364_p13 = scmp.eq.s32.totalorder (!%p1363_p9), %s1136_s25, 0 }
  0x7a   : > { %692 = dma.hbm_to_vmem [thread:$0]  (!%p1362_p12), %s275_s1, 128, %s278_s7, %s1102_s13  }
  0x7b   : > { %286 = sbr.rel (%p1363_p9) target bundleno = 241 (0xf1), region = 36 }
  0x82   : > { %955 = dma.done.wait (%p1364_p13), [#allocation5], 16   ;;  %p1365_p8 = pmov %p1364_p13 }
  0x83   : > { %s292_s15 = sand.u32 1, %s980_s19   ;;  %p1366_p6 = scmp.ne.s32.totalorder %s1354_s26, 0 }
  0x84   : > { %957 = vsyncadd (%p1365_p8), [#allocation5], 4294967280  ;;  %s641_s12 = sshll.u32 %s292_s15, 5  ;;  %s293_s29 = scalar_lea.sflag [#allocation3], %s292_s15 }
  0x85   : > { %s296_s10 = scalar_lea.vmem [#allocation6], %s641_s12 }
  0x86   : > { %959 = dma.done.wait (%p1366_p6), %s293_s29, 512  }
  0x87   : > { %961 = vsyncadd (%p1366_p6), %s293_s29, 4294966784  ;;  %s301_s30 = sand.u32 1, %s1136_s25   ;;  %s305_s8 = scalar_lea.vmem [#allocation7], %s641_s12 }
  0x88   : > { %s302_s13 = scalar_lea.sflag [#allocation8], %s301_s30 }
  0x89   : > { %963 = dma.done.wait (%p1366_p6), %s302_s13, 640  }
  0x8a   : > { %965 = vsyncadd (%p1366_p6), %s302_s13, 4294966656  ;;  %s643_s7 = sshll.u32 %s292_s15, 3 }
  0x8b   : > { %s1251_s1 = scalar_lea.vmem [#allocation9], %s643_s7 }
  0x8c   : > { %319 = sfence }
  0x8d   : > { %p644_p2 = scmp.ne.s32.totalorder %s988_s21, 0 }
  0x8e   : > { %v1004_v0 = vmov (!%p644_p2), 0.0  }
  0x8f   : > { %350 = sbr.rel (%p644_p2) target bundleno = 150 (0x96), region = 56  ;;  %351 = vst [vmem:[#allocation10] sm:$0xff] (!%p644_p2), %v1004_v0  ;;  %352 = vst [vmem:[#allocation11] sm:$0xff] (!%p644_p2), %v1004_v0 }
  0x96 PF: > { %v357_v1 = vld [vmem:[%s296_s10] sm:$0xff]  ;;  %v358_v2 = vld [vmem:[%s296_s10 + $0x8] sm:$0xff]  ;;  %v359_v3 = vld [vmem:[%s296_s10 + $0x10] sm:$0xff]  ;;  %s646_s2 = sld [smem:[#allocation2 + $0x2]]  ;;  %v1005_v40 = vmov 0.0   ;;  %v451_v50 = vlaneseq  ;;  %s353_s21 = sld [smem:[#allocation2]] }
  0x97   : > { %v360_v4 = vld [vmem:[%s296_s10 + $0x18] sm:$0xff]  ;;  %v378_v5 = vmax.f32 %v357_v1, %v358_v2  ;;  %v361_v8 = vld [vmem:[%s305_s8] sm:$0xff]  ;;  %v362_v9 = vld [vmem:[%s305_s8 + $0x8] sm:$0xff]  ;;  %s645_s26 = sld [smem:[#allocation2 + $0x1]]  ;;  %s647_s16 = sld [smem:[#allocation2 + $0x3]] }
  0x98   : > { %v379_v6 = vmax.f32 %v359_v3, %v360_v4  ;;  %v363_v10 = vld [vmem:[%s305_s8 + $0x10] sm:$0xff]  ;;  %v364_v16 = vld [vmem:[%s305_s8 + $0x18] sm:$0xff]  ;;  %v365_v28 = vld [vmem:[%s1251_s1] sm:$0xff]  ;;  %v452_v57 = vshrl.u32 %v451_v50, 7  ;;  %s1006_s11 = smov [#allocation10]   ;;  %p696_p3 = scmp.eq.s32.totalorder %s1136_s25, 1 }
  0x99   : > { %vm366_vm0 = vcmp.eq.s32.totalorder %v365_v28, 0  ;;  %vm367_vm1 = vcmp.eq.s32.totalorder %v365_v28, 1  ;;  %vm368_vm2 = vcmp.eq.s32.totalorder %v365_v28, 2  ;;  %vm369_vm3 = vcmp.eq.s32.totalorder %v365_v28, 3  ;;  %s480_s28 = sshll.u32 %s1006_s11, 4  ;;  %s1007_s14 = smov [#allocation11]   ;;  %s481_s28 = int_to_ptr.vmem [resolvable:$true] %s480_s28 }
  0x9a   : > { %v380_v7 = vmax.f32 %v378_v5, %v379_v6  ;;  %v648_v41 = vsel %vm366_vm0, 1.0, %v1005_v40  ;;  %v649_v42 = vsel %vm367_vm1, 1.0, %v1005_v40  ;;  %v650_v48 = vsel %vm368_vm2, 1.0, %v1005_v40  ;;  %s493_s24 = sshll.u32 %s1007_s14, 4  ;;  %s878_s27 = scalar_lea.vmem %s481_s28, 128  ;;  %s494_s24 = int_to_ptr.vmem [resolvable:$true] %s493_s24 }
  0x9b   : > { %v651_v54 = vsel %vm369_vm3, 1.0, %v1005_v40  ;;  %p879_p5 = scmp.ne.s32.totalorder %s481_s28, %s878_s27  ;;  %p885_p1 = scmp.lt.s32.totalorder %s481_s28, %s481_s28 }
  0x9c   : > { %v416_v11 = vstv %s646_s2  ;;  %v381_v12 = vsub.f32 %v357_v1, %v380_v7  ;;  %v382_v13 = vsub.f32 %v358_v2, %v380_v7  ;;  %v1254_v14 = vsub.f32 %v359_v3, %v380_v7  ;;  %p886_p4 = scmp.lt.s32.totalorder %s878_s27, %s878_s27 }
  0x9d   : > { %v1256_v15 = vsub.f32 %v360_v4, %v380_v7  ;;  %v417_v17 = vmul.f32 %v416_v11, %v361_v8  ;;  %v418_v18 = vmul.f32 %v416_v11, %v362_v9  ;;  %v419_v22 = vmul.f32 %v416_v11, %v363_v10  ;;  %p880_p11 = pnand %p879_p5, %p696_p3 }
  0x9e   : > { %v385_v19 = vmul.f32 1.442695, %v381_v12  ;;  %v387_v20 = vmul.f32 1.442695, %v382_v13  ;;  %v389_v21 = vmul.f32 1.442695, %v1254_v14  ;;  %v420_v24 = vmul.f32 %v416_v11, %v364_v16  ;;  %p887_p7 = por %p886_p4, %p885_p1 }
  0x9f   : > { %v391_v23 = vmul.f32 1.442695, %v1256_v15  ;;  %v421_v25 = vmax.f32 %v417_v17, %v418_v18  ;;  %v398_v46 = vmul.f32 %v648_v41, %v381_v12  ;;  %v399_v47 = vmul.f32 %v649_v42, %v382_v13  ;;  %p881_p0 = pneg %p880_p11 }
  0xa0   : > { %755 = vpow2.f32 %v385_v19  ;;  %v422_v26 = vmax.f32 %v419_v22, %v420_v24  ;;  %v400_v51 = vmul.f32 %v650_v48, %v1254_v14  ;;  %v405_v56 = vadd.f32 %v382_v13, %v381_v12 }
  0xa1   : > { %757 = vpow2.f32 %v387_v20  ;;  %v402_v52 = vadd.f32 %v399_v47, %v398_v46  ;;  %v401_v61 = vmul.f32 %v651_v54, %v1256_v15  ;;  %v454_v3 = vand.u32 127, %v451_v50  ;;  %p888_p10 = pnand %p887_p7, %p881_p0 }
  0xa2   : > { %759 = vpow2.f32 %v389_v21  ;;  %v423_v27 = vmax.f32 %v421_v25, %v422_v26  ;;  %v406_v2 = vadd.f32 %v405_v56, %v1254_v14  ;;  %v458_v4 = vmul.u32 128, %v452_v57 }
  0xa3   : > { %761 = vpow2.f32 %v391_v23  ;;  %v403_v62 = vadd.f32 %v402_v52, %v400_v51  ;;  %v409_v13 = vstv %s353_s21  ;;  %v413_v14 = vstv %s645_s26 }
  0xa4   : > { %v424_v29 = vsub.f32 %v417_v17, %v423_v27  ;;  %v425_v30 = vsub.f32 %v418_v18, %v423_v27  ;;  %v426_v31 = vsub.f32 %v419_v22, %v423_v27  ;;  %v427_v32 = vsub.f32 %v420_v24, %v423_v27  ;;  %v465_v27 = vld [vmem:[#allocation10] sm:$0xff] }
  0xa5   : > { %v404_v6 = vadd.f32 %v403_v62, %v401_v61  ;;  %v407_v11 = vadd.f32 %v406_v2, %v1256_v15  ;;  %v459_v12 = vadd.s32 %v458_v4, %v454_v3  ;;  %v448_v15 = vstv %s647_s16 }
  0xa6   : > { %v428_v33 = vmul.f32 1.442695, %v424_v29  ;;  %v430_v34 = vmul.f32 1.442695, %v425_v30  ;;  %v432_v35 = vmul.f32 1.442695, %v426_v31 }
  0xa7   : > { %v434_v36 = vmul.f32 1.442695, %v427_v32  ;;  %vm460_vm4 = vcmp.lt.s32.totalorder %v459_v12, 256  ;;  %v468_v32 = vld [vmem:[#allocation11] sm:$0xff] }
  0xa8   : > { %763 = vpow2.f32 %v428_v33  ;;  %v652_v24 = vsel %vm460_vm4, 1.0, %v1005_v40 }
  0xa9   : > { %765 = vpow2.f32 %v430_v34 }
  0xaa   : > { %v756_v37 = vpop.eup %755  ;;  %767 = vpow2.f32 %v432_v35 }
  0xab   : > { %v758_v38 = vpop.eup %757  ;;  %769 = vpow2.f32 %v434_v36 }
  0xac   : > { %v760_v39 = vpop.eup %759  ;;  %v393_v43 = vadd.f32 %v758_v38, %v756_v37 }
  0xad   : > { %v762_v44 = vpop.eup %761 }
  0xae   : > { %v394_v45 = vadd.f32 %v760_v39, %v393_v43 }
  0xb0   : > { %v395_v49 = vadd.f32 %v762_v44, %v394_v45 }
  0xb2   : > { %771 = vlog2.f32 %v395_v49  ;;  %v764_v53 = vpop.eup %763 }
  0xb3   : > { %v766_v55 = vpop.eup %765  ;;  %v439_v63 = vmul.f32 %v764_v53, %v648_v41 }
  0xb4   : > { %v768_v58 = vpop.eup %767  ;;  %v436_v59 = vadd.f32 %v766_v55, %v764_v53  ;;  %v440_v0 = vmul.f32 %v766_v55, %v649_v42 }
  0xb5   : > { %v770_v60 = vpop.eup %769  ;;  %v441_v7 = vmul.f32 %v768_v58, %v650_v48 }
  0xb6   : > { %v437_v1 = vadd.f32 %v768_v58, %v436_v59  ;;  %v443_v8 = vadd.f32 %v440_v0, %v439_v63  ;;  %v442_v18 = vmul.f32 %v770_v60, %v651_v54 }
  0xb8   : > { %v438_v5 = vadd.f32 %v770_v60, %v437_v1  ;;  %v444_v19 = vadd.f32 %v443_v8, %v441_v7 }
  0xba   : > { %773 = vrcp.f32 %v438_v5  ;;  %v445_v23 = vadd.f32 %v444_v19, %v442_v18 }
  0xbc   : > { %v772_v9 = vpop.eup %771 }
  0xbd   : > { %v397_v10 = vmul.f32 0.6931472, %v772_v9 }
  0xbf   : > { %v408_v16 = vsub.f32 %v397_v10, %v404_v6  ;;  %v411_v17 = vmul.f32 4.0, %v397_v10 }
  0xc1   : > { %v410_v20 = vmul.f32 %v409_v13, %v408_v16  ;;  %v412_v21 = vsub.f32 %v411_v17, %v407_v11 }
  0xc3   : > { %v414_v22 = vmul.f32 %v413_v14, %v412_v21 }
  0xc4   : > { %v774_v26 = vpop.eup %773 }
  0xc5   : > { %v415_v25 = vadd.f32 %v414_v22, %v410_v20  ;;  %v447_v29 = vmul.f32 %v774_v26, %v445_v23 }
  0xc7   : > { %v463_v28 = vmul.f32 %v652_v24, %v415_v25  ;;  %vm449_vm5 = vcmp.ge.f32.partialorder %v447_v29, %v448_v15 }
  0xc8   : > { %v450_v31 = vsel %vm449_vm5, 1.0, %v1005_v40 }
  0xc9   : > { %v466_v30 = vadd.f32 %v465_v27, %v463_v28  ;;  %v464_v33 = vmul.f32 %v652_v24, %v450_v31 }
  0xcb   : > { %467 = vst [vmem:[#allocation10] sm:$0xff] %v466_v30 }
  0xcc   : > { %891 = shalt.err (!%p888_p10)
}
  0xcd   : > { %s892_s17 = scalar_lea.hbm %s1338_s4, 128 }
  0xce   : > { %p893_p12 = scmp.ne.s32.totalorder %s1338_s4, %s892_s17  ;;  %p898_p8 = scmp.lt.u32.totalorder %s892_s17, %s1338_s4 }
  0xd0   : > { %p894_p9 = pnand %p893_p12, %p696_p3 }
  0xd2   : > { %p895_p13 = pneg %p894_p9 }
  0xd4   : > { %p900_p6 = pnand %p898_p8, %p895_p13 }
  0xd6   : > { %903 = shalt.err (!%p900_p6)
}
  0xd7   : > { %672 = dma.vmem_to_hbm [thread:$0]  (%p696_p3), %s481_s28, 128, %s1338_s4, [#allocation4]   ;;  %v469_v34 = vadd.f32 %v468_v32, %v464_v33 }
  0xd8   : > { %s904_s8 = scalar_lea.vmem %s494_s24, 128  ;;  %p911_p0 = scmp.lt.s32.totalorder %s494_s24, %s494_s24 }
  0xd9   : > { %470 = vst [vmem:[#allocation11] sm:$0xff] %v469_v34  ;;  %p905_p2 = scmp.ne.s32.totalorder %s494_s24, %s904_s8  ;;  %p912_p1 = scmp.lt.s32.totalorder %s904_s8, %s904_s8 }
  0xdb   : > { %p906_p5 = pnand %p905_p2, %p696_p3  ;;  %p913_p4 = por %p912_p1, %p911_p0 }
  0xdd   : > { %p907_p11 = pneg %p906_p5 }
  0xdf   : > { %p914_p7 = pnand %p913_p4, %p907_p11 }
  0xe1   : > { %917 = shalt.err (!%p914_p7)
}
  0xe2   : > { %s918_s2 = scalar_lea.hbm %s1339_s5, 128 }
  0xe3   : > { %p919_p10 = scmp.ne.s32.totalorder %s1339_s5, %s918_s2  ;;  %p924_p13 = scmp.lt.u32.totalorder %s918_s2, %s1339_s5 }
  0xe5   : > { %p920_p12 = pnand %p919_p10, %p696_p3 }
  0xe7   : > { %p921_p9 = pneg %p920_p12 }
  0xe9   : > { %p926_p8 = pnand %p924_p13, %p921_p9 }
  0xeb   : > { %929 = shalt.err (!%p926_p8)
}
  0xec   : > { %674 = dma.vmem_to_hbm [thread:$0]  (%p696_p3), %s494_s24, 128, %s1339_s5, [#allocation12]  }
  0xed   : > { %967 = dma.done.wait (%p696_p3), [#allocation4], 128  }
  0xee   : > { %969 = vsyncadd (%p696_p3), [#allocation4], 4294967168 }
  0xef   : > { %971 = dma.done.wait (%p696_p3), [#allocation12], 128  }
  0xf0   : > { %973 = vsyncadd (%p696_p3), [#allocation12], 4294967168 }
  0xf1 PF: > { %s25_s23 = sadd.s32 1, %s996_s23   ;;  %s1367_s24 = sld [smem:[#allocation18_spill]] }
  0xf2   : > { %p22_p6 = scmp.ge.s32.totalorder %s25_s23, 4   ;;  %s1368_s18 = smov %s980_s19 }
  0xf3   : > { %s1369_s19 = smov %s984_s20  ;;  %s1370_s20 = smov %s1088_s6 }
  0xf4   : > { %s1371_s21 = smov %s992_s22  ;;  %24 = sbr.rel (!%p22_p6) target bundleno = 12 (0xc), region = 116 }
  0xf7   : > { %s1372_s22 = smov %s1367_s24 }
  0xfb   :  { %510 = vsyncpa [#allocation3], 1 }
  0xfc   :  { %512 = vsyncpa [#allocation3 + $0x1], 1 }
  0xfd   :  { %513 = vsyncpa [#allocation8], 1 }
  0xfe   :  { %515 = vsyncpa [#allocation8 + $0x1], 1 }
  0xff   :  { %516 = vsyncpa [#allocation4], 1 }
 0x100   :  { %518 = vsyncpa [#allocation4 + $0x1], 1 }
 0x101   :  { %519 = vsyncpa [#allocation12], 1 }
 0x102   :  { %520 = vsyncpa [#allocation5], 1 }
 0x103   :  { %522 = vsyncpa [#allocation5 + $0x1], 1 }

</bundles_post_ra>
